<compile_context>
chip_gen: v5e
topology: v5e:2x2
jax: 0.10.0
libtpu: 0.0.40
codegen_flags: <defaults>
</compile_context>

<pallas_src>
import functools

import jax
import jax.numpy as jnp
from jax.experimental import pallas as pl
from jax.experimental.pallas import tpu as pltpu

EPS = 1e-8


# ---------------------------------------------------------------------------
# Stage 1: streaming per-row sums of y_pred over the (flattened) feature axis.
# ---------------------------------------------------------------------------
def _rowsum_kernel(yp_ref, out_ref, *, feat, tile_f, blocks_total, bps, need_mask):
    s = pl.program_id(0)   # feature-range split (parallel; maps to a TC on v7x)
    k = pl.program_id(1)   # tile within the split (arbitrary / reduction axis)

    @pl.when(k == 0)
    def _init():
        out_ref[...] = jnp.zeros_like(out_ref)

    yp = yp_ref[...].astype(jnp.float32)            # (rows, tile_f)

    if need_mask:
        gidx = s * bps + k                          # intended global tile index

        @pl.when(gidx < blocks_total - 1)
        def _full_tile():                           # hot path: no masking work
            out_ref[...] += jnp.sum(yp, axis=1, keepdims=True)

        @pl.when(gidx >= blocks_total - 1)
        def _edge_tile():
            # Loop-invariant lane iota; only the scalar threshold changes per
            # step.  limit <= 0 on clamped padding steps (fully masked out).
            lane = jax.lax.broadcasted_iota(jnp.int32, yp.shape, 1)
            limit = feat - gidx * tile_f
            masked = jnp.where(lane < limit, yp, 0.0)
            out_ref[...] += jnp.sum(masked, axis=1, keepdims=True)
    else:
        out_ref[...] += jnp.sum(yp, axis=1, keepdims=True)


# ---------------------------------------------------------------------------
# Stage 2 / equal-ndim path: min-max normalize pred, per-column Pearson,
# clamp, -mean -> (1, 1) scalar.  Inputs are tiny, one full-block invocation.
# ---------------------------------------------------------------------------
def _pearson_kernel(yp_ref, yt_ref, out_ref):
    yp = yp_ref[...].astype(jnp.float32)            # (N, P)  (P=1 on reduced path)
    yt = yt_ref[...].astype(jnp.float32)            # (N, T)

    mn = jnp.min(yp, keepdims=True)
    mx = jnp.max(yp, keepdims=True)
    ypn = (yp - mn) / (mx - mn + EPS)

    pred_mean = jnp.mean(ypn, axis=0, keepdims=True)
    true_mean = jnp.mean(yt, axis=0, keepdims=True)
    pred_diff = ypn - pred_mean
    true_diff = yt - true_mean

    num = jnp.sum(pred_diff * true_diff, axis=0, keepdims=True)
    den = jnp.sqrt(
        jnp.sum(pred_diff * pred_diff, axis=0, keepdims=True)
        * jnp.sum(true_diff * true_diff, axis=0, keepdims=True)
        + EPS
    )
    corr = jnp.clip(num / den, -1.0 + EPS, 1.0 - EPS)
    out_ref[...] = (-jnp.mean(corr)).reshape(1, 1)


def _pearson_scalar(y_pred_2d, y_true):
    out = pl.pallas_call(
        _pearson_kernel,
        out_shape=jax.ShapeDtypeStruct((1, 1), jnp.float32),
        in_specs=[pl.BlockSpec(memory_space=pltpu.MemorySpace.VMEM),
                  pl.BlockSpec(memory_space=pltpu.MemorySpace.VMEM)],
        out_specs=pl.BlockSpec(memory_space=pltpu.MemorySpace.VMEM),
    )(y_pred_2d, y_true)
    return out[0, 0]


# ---------------------------------------------------------------------------
# Sizing helpers.
# ---------------------------------------------------------------------------
def _scoped_vmem_limit():
    """Generation-aware scoped-VMEM limit (96 MiB on 128 MiB parts, 48 on v7x)."""
    cap = 128 * 1024 * 1024
    try:
        cap = int(getattr(pltpu.get_tpu_info(), "vmem_capacity_bytes", cap)) or cap
    except Exception:
        cap = 64 * 1024 * 1024      # unknown chip: size as if v7x (64 MiB VMEM)
    return min(cap * 3 // 4, 96 * 1024 * 1024)


def _choose_tile_f(rows, feat, itemsize, vmem_limit, max_block_bytes):
    """Lane-multiple tile; multi-MiB blocks to amortize per-grid-step overhead."""
    if max_block_bytes is None:
        # VMEM per block element: 2 double-buffered copies of the input tile
        # plus worst-case full-block f32 temporaries on the masked edge tile
        # (cast + iota + select).
        per_elem = 2 * itemsize + 12
        block_elems = int(vmem_limit * 0.6) // per_elem
        block_bytes = block_elems * itemsize
    else:
        block_bytes = max_block_bytes
    tile_f = block_bytes // max(1, rows * itemsize)
    if tile_f >= feat:
        return int(feat)                              # single full-extent block
    return int(max(128, (tile_f // 128) * 128))       # lane-multiple tile


def _sublane_fold(n_rows, n_feat, itemsize):
    """Fold (N, F) -> (N*G, F/G) so packed sublanes are full for small N."""
    target = max(8, 32 // max(1, itemsize))   # 8 for f32, 16 for bf16, 32 for int8
    fold = 1
    while n_rows * fold < target and n_feat % (fold * 2) == 0:
        fold *= 2
    return fold


# ---------------------------------------------------------------------------
# Reduced path (ndims differ): pred -> per-row mean -> Pearson vs y_true.
# ---------------------------------------------------------------------------
def _npc_reduced_path(y_pred_2d, y_true, max_block_bytes=None):
    n_rows, n_feat = y_pred_2d.shape
    itemsize = y_pred_2d.dtype.itemsize

    fold = _sublane_fold(n_rows, n_feat, itemsize)
    rows, feat = n_rows * fold, n_feat // fold
    yp = y_pred_2d.reshape(rows, feat)       # row-major regroup: free, no copy

    vmem_limit = _scoped_vmem_limit()
    tile_f = _choose_tile_f(rows, feat, itemsize, vmem_limit, max_block_bytes)
    blocks_total = pl.cdiv(feat, tile_f)
    n_splits = 2 if blocks_total >= 2 else 1   # 2 feature halves -> 2 TCs on v7x
    bps = pl.cdiv(blocks_total, n_splits)      # tiles per split
    need_mask = (feat % tile_f != 0) or (n_splits * bps != blocks_total)

    kernel = functools.partial(
        _rowsum_kernel, feat=feat, tile_f=tile_f,
        blocks_total=blocks_total, bps=bps, need_mask=need_mask)

    partials = pl.pallas_call(
        kernel,
        out_shape=jax.ShapeDtypeStruct((n_splits, rows, 1), jnp.float32),
        grid_spec=pltpu.PrefetchScalarGridSpec(
            num_scalar_prefetch=0,
            grid=(n_splits, bps),
            in_specs=[pl.BlockSpec(
                (rows, tile_f),
                # Clamp padding steps of the last split back in range; their
                # contribution is masked to zero inside the kernel.
                lambda s, k: (0, jnp.minimum(s * bps + k, blocks_total - 1)))],
            out_specs=pl.BlockSpec((None, rows, 1), lambda s, k: (s, 0, 0)),
        ),
        compiler_params=pltpu.CompilerParams(
            dimension_semantics=("parallel", "arbitrary"),
            vmem_limit_bytes=vmem_limit),
        cost_estimate=pl.CostEstimate(
            flops=2 * rows * feat, transcendentals=0,
            bytes_accessed=rows * feat * itemsize + n_splits * rows * 4),
    )(yp)

    # Cross-stage scalar glue (<= n_splits * rows elements): fold the split /
    # sublane-fold partials back into one mean per original row.
    row_sum = partials.sum(axis=0)                               # (rows, 1)
    if fold > 1:
        row_sum = row_sum.reshape(n_rows, fold, 1).sum(axis=1)   # (n_rows, 1)
    row_mean = row_sum * (1.0 / n_feat)                          # exact 1/F scale
    return _pearson_scalar(row_mean, y_true)


def negative_pearson_correlation(y_pred, y_true, *, max_block_bytes=None):
    """Matches NegativePearsonCorrelation.forward(y_pred, y_true)."""
    if y_pred.ndim != y_true.ndim:
        # Layout glue only (no compute): flatten NCHW -> (N, F) in native dtype.
        # NOTE: the row mean is accumulated in f32 (PyTorch accumulates in the
        # input dtype before .float()); identical for f32 inputs.
        y_pred_2d = y_pred.reshape(y_pred.shape[0], -1)
        return _npc_reduced_path(y_pred_2d, y_true, max_block_bytes)
    # Equal rank: PyTorch skips the view/mean; run the direct kernel.
    return _pearson_scalar(y_pred, y_true)


# ---------------------------------------------------------------------------
# Pure-JAX reference mirroring the PyTorch module (sanity check).
# ---------------------------------------------------------------------------
def _reference(y_pred, y_true):
    if y_pred.ndim != y_true.ndim:
        y_pred = (y_pred.reshape(y_pred.shape[0], -1)
                  .astype(jnp.float32).mean(axis=1, keepdims=True))
    y_pred = y_pred.astype(jnp.float32)
    y_true = y_true.astype(jnp.float32)
    y_pred = (y_pred - y_pred.min()) / (y_pred.max() - y_pred.min() + EPS)
    pred_mean = y_pred.mean(axis=0)
    true_mean = y_true.mean(axis=0)
    pred_diff = y_pred - pred_mean
    true_diff = y_true - true_mean
    num = (pred_diff * true_diff).sum(axis=0)
    den = jnp.sqrt((pred_diff ** 2).sum(axis=0) * (true_diff ** 2).sum(axis=0) + EPS)
    corr = jnp.clip(num / den, -1.0 + EPS, 1.0 - EPS)
    return -corr.mean()


if __name__ == "__main__":
    key = jax.random.PRNGKey(0)
    ks = jax.random.split(key, 8)

    # DeepPhys path: 4D prediction, 2D target (F = 4*16*16 = 1024, single block).
    N, C, H, W = 8, 4, 16, 16
    y_pred = jax.random.normal(ks[0], (N, C, H, W), dtype=jnp.float32)
    y_true = jax.random.normal(ks[1], (N, 1), dtype=jnp.float32)
    loss = jax.block_until_ready(negative_pearson_correlation(y_pred, y_true))
    ref = _reference(y_pred, y_true)
    assert jnp.allclose(loss, ref, atol=1e-4, rtol=1e-4), (loss, ref)

    # Multi-tile path with an odd tile count and a partial last tile
    # (exercises the parallel split, index clamp and pl.when-gated masking).
    yp3 = jax.random.normal(ks[2], (8, 5, 220), dtype=jnp.float32)   # F = 1100
    yt3 = jax.random.normal(ks[3], (8, 1), dtype=jnp.float32)
    loss3 = jax.block_until_ready(
        negative_pearson_correlation(yp3, yt3, max_block_bytes=8192))
    ref3 = _reference(yp3, yt3)
    assert jnp.allclose(loss3, ref3, atol=1e-4, rtol=1e-4), (loss3, ref3)

    # bf16 prediction: exercises the sublane fold (N=8 -> rows=16).
    yp4 = jax.random.normal(ks[4], (8, 5, 220), dtype=jnp.bfloat16)
    yt4 = jax.random.normal(ks[5], (8, 1), dtype=jnp.float32)
    loss4 = jax.block_until_ready(
        negative_pearson_correlation(yp4, yt4, max_block_bytes=8192))
    ref4 = _reference(yp4, yt4)
    assert jnp.allclose(loss4, ref4, atol=2e-3, rtol=2e-3), (loss4, ref4)

    # Equal-ndim path (both 2D, multi-column correlation).
    yp2 = jax.random.normal(ks[6], (8, 4), dtype=jnp.float32)
    yt2 = jax.random.normal(ks[7], (8, 4), dtype=jnp.float32)
    loss2 = jax.block_until_ready(negative_pearson_correlation(yp2, yt2))
    ref2 = _reference(yp2, yt2)
    assert jnp.allclose(loss2, ref2, atol=1e-4, rtol=1e-4), (loss2, ref2)

    print("KERNEL_OK")
</pallas_src>

<mosaic_0001>
module attributes {stable_mosaic.version = 11 : i64} {
  func.func @_rowsum_kernel(%arg0: i32, %arg1: i32, %arg2: memref<8x1024xf32, #tpu.memory_space<vmem>>, %arg3: memref<1x8x1xf32, #tpu.memory_space<vmem>>) attributes {dimension_semantics = [#tpu.dimension_semantics<parallel>, #tpu.dimension_semantics<arbitrary>], iteration_bounds = array<i64: 1, 1>, scalar_prefetch = 0 : i64, scratch_operands = 0 : i64, tpu.core_type = #tpu.core_type<tc>, window_params = [{transform_indices = @transform_0, window_bounds = array<i64: 8, 1024>}, {transform_indices = @transform_1, window_bounds = array<i64: 1, 8, 1>}]} {
    %c0_i32 = arith.constant 0 : i32
    %0 = arith.cmpi eq, %arg1, %c0_i32 : i32
    %1 = arith.extui %0 : i1 to i32
    %c0_i32_0 = arith.constant 0 : i32
    %2 = arith.cmpi ne, %1, %c0_i32_0 : i32
    scf.if %2 {
      %cst_8 = arith.constant 0.000000e+00 : f32
      %12 = vector.broadcast %cst_8 : f32 to vector<8x1xf32>
      %c0_9 = arith.constant 0 : index
      %c0_10 = arith.constant 0 : index
      %c0_11 = arith.constant 0 : index
      %13 = vector.load %arg3[%c0_9, %c0_10, %c0_11] : memref<1x8x1xf32, #tpu.memory_space<vmem>>, vector<1x8x1xf32>
      %14 = vector.shape_cast %13 : vector<1x8x1xf32> to vector<8x1xf32>
      %15 = vector.shape_cast %12 : vector<8x1xf32> to vector<1x8x1xf32>
      tpu.vector_store %arg3[%c0_9, %c0_10, %c0_11], %15 {strides = array<i32>} : memref<1x8x1xf32, #tpu.memory_space<vmem>>, vector<1x8x1xf32>,
    } else {
    }
    %c0 = arith.constant 0 : index
    %c0_1 = arith.constant 0 : index
    %3 = vector.load %arg2[%c0, %c0_1] : memref<8x1024xf32, #tpu.memory_space<vmem>>, vector<8x1024xf32>
    %c0_2 = arith.constant 0 : index
    %c0_3 = arith.constant 0 : index
    %c0_4 = arith.constant 0 : index
    %4 = vector.load %arg3[%c0_2, %c0_3, %c0_4] : memref<1x8x1xf32, #tpu.memory_space<vmem>>, vector<1x8x1xf32>
    %5 = vector.shape_cast %4 : vector<1x8x1xf32> to vector<8x1xf32>
    %cst = arith.constant dense<0.000000e+00> : vector<8xf32>
    %6 = vector.multi_reduction <add>, %3, %cst [1] : vector<8x1024xf32> to vector<8xf32>
    %7 = vector.shape_cast %6 : vector<8xf32> to vector<8x1xf32>
    %8 = arith.addf %5, %7 : vector<8x1xf32>
    %c0_5 = arith.constant 0 : index
    %c0_6 = arith.constant 0 : index
    %c0_7 = arith.constant 0 : index
    %9 = vector.load %arg3[%c0_5, %c0_6, %c0_7] : memref<1x8x1xf32, #tpu.memory_space<vmem>>, vector<1x8x1xf32>
    %10 = vector.shape_cast %9 : vector<1x8x1xf32> to vector<8x1xf32>
    %11 = vector.shape_cast %8 : vector<8x1xf32> to vector<1x8x1xf32>
    tpu.vector_store %arg3[%c0_5, %c0_6, %c0_7], %11 {strides = array<i32>} : memref<1x8x1xf32, #tpu.memory_space<vmem>>, vector<1x8x1xf32>,
    return
  }
  func.func @transform_0(%arg0: i32, %arg1: i32) -> (i32, i32) {
    %c1_i32 = arith.constant 1 : i32
    %0 = arith.muli %arg0, %c1_i32 : i32
    %1 = arith.addi %0, %arg1 : i32
    %c0_i32 = arith.constant 0 : i32
    %2 = arith.minsi %1, %c0_i32 : i32
    %c0_i32_0 = arith.constant 0 : i32
    %c0_i32_1 = arith.constant 0 : i32
    return %c0_i32_0, %2 : i32, i32
  }
  func.func @transform_1(%arg0: i32, %arg1: i32) -> (i32, i32, i32) {
    %c0_i32 = arith.constant 0 : i32
    %c0_i32_0 = arith.constant 0 : i32
    %c0_i32_1 = arith.constant 0 : i32
    return %arg0, %c0_i32, %c0_i32_0 : i32, i32, i32
  }
}

</mosaic_0001>

<bundles_post_ra>
// kernel: tpu_custom_call.1
= control target key start
LH: loop header
LB: loop body
LE: loop exit
PB: predicated region body
PF: predicated region fallthrough
CT: control target
= control target key end

     0   :  { %6 = vsyncpa [#allocation3], 0  ;;  %s94_s9 = smov [#allocation2]   ;;  %s120_s0 = inlined_call_operand.hbm [shape: f32[8,1024], index: 0, kind: input, shape index: {}]   ;;  %s121_s1 = inlined_call_operand.vmem [shape: f32[1,8,1], index: 1, kind: output, shape index: {}]  }
   0x1   :  { %s18_s8 = sshll.u32 %s120_s0, 4  ;;  %s20_s10 = sshll.u32 %s94_s9, 4  ;;  %s19_s8 = int_to_ptr.hbm [resolvable:$true] %s18_s8  ;;  %s21_s10 = int_to_ptr.vmem [resolvable:$true] %s20_s10 }
   0x2   :  { %23 = dma.hbm_to_vmem [thread:$0]  %s19_s8, 1024, %s21_s10, [#allocation3]  }
   0x3   :  { %92 = dma.done.wait [#allocation3], 1024  }
   0x4   :  { %93 = vsyncadd [#allocation3], 4294966272  ;;  %vm36_vm0 = vcmask 7168   ;;  %v95_v0 = vmov 0.0   ;;  %v38_v1 = vld [vmem:[#allocation2] sm:$0xff]  ;;  %v39_v2 = vld [vmem:[#allocation2 + $0x8] sm:$0xff] }
   0x5   :  { %37 = vst.msk [vmem:[%s121_s1] sm:$0xff] %vm36_vm0, %v95_v0  ;;  %v40_v3 = vld [vmem:[#allocation2 + $0x10] sm:$0xff]  ;;  %v47_v4 = vadd.f32 %v39_v2, %v38_v1  ;;  %v41_v5 = vld [vmem:[#allocation2 + $0x18] sm:$0xff]  ;;  %v42_v7 = vld [vmem:[#allocation2 + $0x20] sm:$0xff] }
   0x6   :  { %v43_v9 = vld [vmem:[#allocation2 + $0x28] sm:$0xff]  ;;  %v44_v11 = vld [vmem:[#allocation2 + $0x30] sm:$0xff]  ;;  %v45_v13 = vld [vmem:[#allocation2 + $0x38] sm:$0xff] }
   0x7   :  { %v48_v6 = vadd.f32 %v47_v4, %v40_v3 }
   0x9   :  { %v49_v8 = vadd.f32 %v48_v6, %v41_v5 }
   0xb   :  { %v50_v10 = vadd.f32 %v49_v8, %v42_v7 }
   0xc   :  { %v46_v16 = vld [vmem:[%s121_s1] sm:$0xff] }
   0xd   :  { %v51_v12 = vadd.f32 %v50_v10, %v43_v9 }
   0xf   :  { %v52_v14 = vadd.f32 %v51_v12, %v44_v11 }
  0x11   :  { %v53_v15 = vadd.f32 %v52_v14, %v45_v13 }
  0x13   :  { %54 = vadd.xlane.f32.xlu0 %v53_v15 }
  0x86   :  { %v55_v17 = vpop.xlane.xlu0 %54 }
  0x87   :  { %v56_v18 = vadd.f32 %v55_v17, %v46_v16 }
  0x89   :  { %58 = vst.msk [vmem:[%s121_s1] sm:$0xff] %vm36_vm0, %v56_v18 }
  0x8a   :  { %63 = vsyncpa [#allocation3], 1 }

</bundles_post_ra>
